<compile_context>
chip_gen: v7x
topology: tpu7x:2x2x1
jax: 0.10.0
libtpu: 0.0.40
codegen_flags: <defaults>
</compile_context>

<pallas_src>
import functools
from math import sqrt

import jax
import jax.numpy as jnp
from jax.experimental import pallas as pl
from jax.experimental.pallas import tpu as pltpu


def prime_factors(n):
    factors = {}
    count = 0
    while n % 2 == 0:
        count += 1
        n //= 2
    if count > 0:
        factors[2] = count
    i = 3
    while i * i <= n:
        count = 0
        while n % i == 0:
            count += 1
            n //= i
        if count > 0:
            factors[i] = count
        i += 2
    if n > 2:
        factors[n] = 1
    return factors


# ----------------------------------------------------------------------------
# Structured-weight construction (wrapper-side, tiny XLA work on the weights).
#
# Conv weight w_hwio: (k, k, Cin, Cout) with PyTorch PixelShuffle channel order
# o = c*r*r + ri*r + rj.  We build, per vertical tap kh, a matrix
#   M[kh, wq*C + ci, col(ri, w, rj, c)] = w_hwio[kh, wq - w + p, ci, o]   (band)
# so that   y[h, col] = sum_kh  xpad[h+kh, :] @ M[kh]
# is the conv output already permuted into PixelShuffle order: reshaping the
# stage output (N, H, r*W*r*C) to (N, H*r, W*r, C) IS the pixel shuffle.
# Horizontal zero padding is absorbed by the band structure (missing taps = 0),
# so the kernel only needs vertical halo rows.
# ----------------------------------------------------------------------------

def build_structured_weight(w_hwio, *, W, C, r, k):
    p = k // 2
    # [kh, kw, ci, c, ri, rj] -> [kh, kw, ci, ri, rj, c]
    wp = jnp.transpose(w_hwio.reshape(k, k, C, C, r, r), (0, 1, 2, 4, 5, 3))
    wq = jnp.arange(W)[None, :]          # source column within the row
    wo = jnp.arange(W)[:, None]          # output spatial position w
    kw_rel = wq - wo + p                 # (W_out, W_src)
    valid = (kw_rel >= 0) & (kw_rel < k)
    kw_idx = jnp.clip(kw_rel, 0, k - 1)
    # B[kh, w, wq, ci, ri, rj, c]
    B = wp[:, kw_idx]
    B = jnp.where(valid[None, :, :, None, None, None, None], B, 0.0)
    # -> [kh, wq, ci, ri, w, rj, c] -> (k, W*C, r*W*r*C)
    B = jnp.transpose(B, (0, 2, 3, 4, 1, 5, 6))
    return B.reshape(k, W * C, r * W * r * C)


def build_bias_row(b, *, W, C, r):
    # b[o], o = c*r*r + ri*r + rj  ->  row[col(ri, w, rj, c)]
    bb = jnp.transpose(b.reshape(C, r, r), (1, 2, 0))            # [ri, rj, c]
    row = jnp.broadcast_to(bb[:, None, :, :], (r, W, r, C))      # [ri, w, rj, c]
    return row.reshape(1, r * W * r * C).astype(jnp.float32)


# ----------------------------------------------------------------------------
# Fused per-stage Pallas kernel: conv(k x k, pad k//2) + bias + ReLU + PixelShuffle
# column ordering, all lane-dense.  One grid step per image.
# ----------------------------------------------------------------------------

def _upsample_stage_kernel(x_ref, m_ref, b_ref, o_ref, xpad_ref, *, H, p, k):
    WC = x_ref.shape[2]          # W * Cin  (lane-dense input rows)
    Nc = m_ref.shape[2]          # r * W * r * C (lane-dense output rows)

    # Vertical halo rows only (horizontal padding is folded into M's band structure).
    xpad_ref[0:p, :] = jnp.zeros((p, WC), xpad_ref.dtype)
    xpad_ref[p + H:p + H + p, :] = jnp.zeros((p, WC), xpad_ref.dtype)
    # Interior copy: lane-aligned, full-width rows.
    xpad_ref[p:p + H, :] = x_ref[0]

    # k accumulated MXU dots, bf16 inputs, f32 accumulation.
    acc = jnp.zeros((H, Nc), jnp.float32)
    for kh in range(k):
        a = xpad_ref[kh:kh + H, :].astype(jnp.bfloat16)
        acc = acc + jnp.dot(a, m_ref[kh], preferred_element_type=jnp.float32)

    # Fused epilogue: bias + ReLU (ReLU commutes with the shuffle permutation).
    o_ref[0] = jnp.maximum(acc + b_ref[...], 0.0).astype(o_ref.dtype)


def upsample_stage(x_flat, w_hwio, b, *, H, W, C, r, k):
    """x_flat: (N, H, W*C) f32 -> (N, H, r*W*r*C) f32 (conv + bias + ReLU, columns in
    PixelShuffle (ri, w, rj, c) order so a plain reshape finishes the shuffle)."""
    N = x_flat.shape[0]
    p = k // 2
    Nc = r * W * r * C
    M = build_structured_weight(w_hwio, W=W, C=C, r=r, k=k).astype(jnp.bfloat16)
    b_row = build_bias_row(b, W=W, C=C, r=r)

    kern = functools.partial(_upsample_stage_kernel, H=H, p=p, k=k)
    return pl.pallas_call(
        kern,
        out_shape=jax.ShapeDtypeStruct((N, H, Nc), jnp.float32),
        grid=(N,),
        in_specs=[
            pl.BlockSpec((1, H, W * C), lambda n: (n, 0, 0)),
            pl.BlockSpec((k, W * C, Nc), lambda n: (0, 0, 0)),
            pl.BlockSpec((1, Nc), lambda n: (0, 0)),
        ],
        out_specs=pl.BlockSpec((1, H, Nc), lambda n: (n, 0, 0)),
        scratch_shapes=[pltpu.VMEM((H + 2 * p, W * C), jnp.float32)],
        compiler_params=pltpu.CompilerParams(
            dimension_semantics=("parallel",)),
    )(x_flat, M, b_row)


# ----------------------------------------------------------------------------
# Module forward: NCHW in/out (PyTorch contract); stages chain via free reshapes.
# ----------------------------------------------------------------------------

def upsample_layer_forward(params, x_nchw, *, factors, k):
    N, C, H, W = x_nchw.shape
    x = jnp.transpose(x_nchw, (0, 2, 3, 1)).reshape(N, H, W * C)   # NCHW -> (N,H,W*C) once
    for (w, b), r in zip(params, factors):
        y = upsample_stage(x, w, b, H=H, W=W, C=C, r=r, k=k)       # (N, H, r*W*r*C)
        H, W = H * r, W * r
        x = y.reshape(N, H, W * C)                                 # free reshape = PixelShuffle
    x = x.reshape(N, H, W, C)
    return jnp.transpose(x, (0, 3, 1, 2))                          # back to NCHW


# ----------------------------------------------------------------------------
# bf16-consistent XLA reference (lax.conv + NCHW pixel shuffle).
# ----------------------------------------------------------------------------

def reference_forward(params, x_nchw, factors, k):
    x = x_nchw
    p = k // 2
    for (w, b), r in zip(params, factors):
        w_oihw = jnp.transpose(w, (3, 2, 0, 1)).astype(jnp.bfloat16)
        y = jax.lax.conv_general_dilated(
            x.astype(jnp.bfloat16), w_oihw, window_strides=(1, 1),
            padding=[(p, p), (p, p)],
            dimension_numbers=("NCHW", "OIHW", "NCHW"),
            preferred_element_type=jnp.float32)
        y = y + b.reshape(1, -1, 1, 1)
        Nn, Crr, Hh, Ww = y.shape
        Cc = Crr // (r * r)
        y = y.reshape(Nn, Cc, r, r, Hh, Ww).transpose(0, 1, 4, 2, 5, 3)
        y = y.reshape(Nn, Cc, Hh * r, Ww * r)
        x = jnp.maximum(y, 0.0)
    return x


# ----------------------------------------------------------------------------

if __name__ == "__main__":
    N, C, H, W = 2, 4, 16, 16
    K = 3
    FACTOR = 4      # primeFactors(4) = {2: 2} -> two Conv->PixelShuffle(2)->ReLU stages

    factors = []
    for n_f, cnt in prime_factors(FACTOR).items():
        factors.extend([n_f] * cnt)

    key = jax.random.PRNGKey(0)
    params = []
    for r in factors:
        key, wk, bk = jax.random.split(key, 3)
        bound = 1.0 / sqrt(C * K * K)
        w = jax.random.uniform(wk, (K, K, C, C * r * r), jnp.float32, -bound, bound)
        b = jax.random.uniform(bk, (C * r * r,), jnp.float32, -bound, bound)
        params.append((w, b))

    key, xk = jax.random.split(key)
    x = jax.random.normal(xk, (N, C, H, W), dtype=jnp.float32)

    fwd = jax.jit(functools.partial(upsample_layer_forward,
                                    factors=tuple(factors), k=K))
    out = fwd(params, x)
    jax.block_until_ready(out)

    total = 1
    for r in factors:
        total *= r
    assert out.shape == (N, C, H * total, W * total), out.shape
    assert bool(jnp.all(jnp.isfinite(out)))
    assert bool(jnp.all(out >= 0.0))        # last op of the module is ReLU

    # Numerical check vs a bf16-consistent XLA reference (same bf16 inputs, f32
    # accumulation on both sides); only f32 summation-order noise remains, so the
    # tolerance is tight enough to catch any tap/shuffle indexing bug.
    ref = reference_forward(params, x, factors, K)
    max_err = float(jnp.max(jnp.abs(out - ref)))
    assert bool(jnp.allclose(out, ref, atol=1e-3, rtol=1e-3)), max_err

    print("KERNEL_OK")
</pallas_src>

<mosaic_0001>
module attributes {stable_mosaic.version = 11 : i64} {
  func.func @_upsample_stage_kernel(%arg0: i32, %arg1: memref<1x16x64xf32, #tpu.memory_space<vmem>>, %arg2: memref<3x64x256xbf16, #tpu.memory_space<vmem>>, %arg3: memref<1x256xf32, #tpu.memory_space<vmem>>, %arg4: memref<1x16x256xf32, #tpu.memory_space<vmem>>, %arg5: memref<18x64xf32, #tpu.memory_space<vmem>>) attributes {dimension_semantics = [#tpu.dimension_semantics<parallel>], iteration_bounds = array<i64: 2>, scalar_prefetch = 0 : i64, scratch_operands = 1 : i64, tpu.core_type = #tpu.core_type<tc>, window_params = [{transform_indices = @transform_0, window_bounds = array<i64: 1, 16, 64>}, {pipeline_mode = #tpu.pipeline_mode<synchronous>, transform_indices = @transform_1, window_bounds = array<i64: 3, 64, 256>}, {pipeline_mode = #tpu.pipeline_mode<synchronous>, transform_indices = @transform_2, window_bounds = array<i64: 1, 256>}, {transform_indices = @transform_3, window_bounds = array<i64: 1, 16, 256>}]} {
    %cst = arith.constant 0.000000e+00 : f32
    %0 = vector.broadcast %cst : f32 to vector<1x64xf32>
    %c0 = arith.constant 0 : index
    %c0_0 = arith.constant 0 : index
    %1 = vector.load %arg5[%c0, %c0_0] : memref<18x64xf32, #tpu.memory_space<vmem>>, vector<1x64xf32>
    tpu.vector_store %arg5[%c0, %c0_0], %0 {strides = array<i32>} : memref<18x64xf32, #tpu.memory_space<vmem>>, vector<1x64xf32>,
    %cst_1 = arith.constant 0.000000e+00 : f32
    %2 = vector.broadcast %cst_1 : f32 to vector<1x64xf32>
    %c17 = arith.constant 17 : index
    %c0_2 = arith.constant 0 : index
    %3 = vector.load %arg5[%c17, %c0_2] : memref<18x64xf32, #tpu.memory_space<vmem>>, vector<1x64xf32>
    tpu.vector_store %arg5[%c17, %c0_2], %2 {strides = array<i32>} : memref<18x64xf32, #tpu.memory_space<vmem>>, vector<1x64xf32>,
    %c0_3 = arith.constant 0 : index
    %c0_4 = arith.constant 0 : index
    %c0_5 = arith.constant 0 : index
    %4 = vector.load %arg1[%c0_3, %c0_4, %c0_5] : memref<1x16x64xf32, #tpu.memory_space<vmem>>, vector<1x16x64xf32>
    %5 = vector.shape_cast %4 : vector<1x16x64xf32> to vector<16x64xf32>
    %c1 = arith.constant 1 : index
    %c0_6 = arith.constant 0 : index
    %6 = vector.load %arg5[%c1, %c0_6] : memref<18x64xf32, #tpu.memory_space<vmem>>, vector<16x64xf32>
    tpu.vector_store %arg5[%c1, %c0_6], %5 {strides = array<i32>} : memref<18x64xf32, #tpu.memory_space<vmem>>, vector<16x64xf32>,
    %cst_7 = arith.constant 0.000000e+00 : f32
    %7 = vector.broadcast %cst_7 : f32 to vector<16x256xf32>
    %c0_8 = arith.constant 0 : index
    %c0_9 = arith.constant 0 : index
    %8 = vector.load %arg5[%c0_8, %c0_9] : memref<18x64xf32, #tpu.memory_space<vmem>>, vector<16x64xf32>
    %9 = arith.truncf %8 : vector<16x64xf32> to vector<16x64xbf16>
    %c0_10 = arith.constant 0 : index
    %c0_11 = arith.constant 0 : index
    %c0_12 = arith.constant 0 : index
    %10 = vector.load %arg2[%c0_10, %c0_11, %c0_12] : memref<3x64x256xbf16, #tpu.memory_space<vmem>>, vector<1x64x256xbf16>
    %11 = vector.shape_cast %10 : vector<1x64x256xbf16> to vector<64x256xbf16>
    %cst_13 = arith.constant dense<0.000000e+00> : vector<16x256xf32>
    %12 = tpu.matmul %9, %11, %cst_13 {dimension_numbers = #tpu.dot_dimension_numbers<[1], [0], [0], [1], [0, 0, 1, 1], [], []>} : vector<16x64xbf16>, vector<64x256xbf16>, vector<16x256xf32> -> vector<16x256xf32>
    %13 = arith.addf %7, %12 : vector<16x256xf32>
    %c1_14 = arith.constant 1 : index
    %c0_15 = arith.constant 0 : index
    %14 = vector.load %arg5[%c1_14, %c0_15] : memref<18x64xf32, #tpu.memory_space<vmem>>, vector<16x64xf32>
    %15 = arith.truncf %14 : vector<16x64xf32> to vector<16x64xbf16>
    %c1_16 = arith.constant 1 : index
    %c0_17 = arith.constant 0 : index
    %c0_18 = arith.constant 0 : index
    %16 = vector.load %arg2[%c1_16, %c0_17, %c0_18] : memref<3x64x256xbf16, #tpu.memory_space<vmem>>, vector<1x64x256xbf16>
    %17 = vector.shape_cast %16 : vector<1x64x256xbf16> to vector<64x256xbf16>
    %cst_19 = arith.constant dense<0.000000e+00> : vector<16x256xf32>
    %18 = tpu.matmul %15, %17, %cst_19 {dimension_numbers = #tpu.dot_dimension_numbers<[1], [0], [0], [1], [0, 0, 1, 1], [], []>} : vector<16x64xbf16>, vector<64x256xbf16>, vector<16x256xf32> -> vector<16x256xf32>
    %19 = arith.addf %13, %18 : vector<16x256xf32>
    %c2 = arith.constant 2 : index
    %c0_20 = arith.constant 0 : index
    %20 = vector.load %arg5[%c2, %c0_20] : memref<18x64xf32, #tpu.memory_space<vmem>>, vector<16x64xf32>
    %21 = arith.truncf %20 : vector<16x64xf32> to vector<16x64xbf16>
    %c2_21 = arith.constant 2 : index
    %c0_22 = arith.constant 0 : index
    %c0_23 = arith.constant 0 : index
    %22 = vector.load %arg2[%c2_21, %c0_22, %c0_23] : memref<3x64x256xbf16, #tpu.memory_space<vmem>>, vector<1x64x256xbf16>
    %23 = vector.shape_cast %22 : vector<1x64x256xbf16> to vector<64x256xbf16>
    %cst_24 = arith.constant dense<0.000000e+00> : vector<16x256xf32>
    %24 = tpu.matmul %21, %23, %cst_24 {dimension_numbers = #tpu.dot_dimension_numbers<[1], [0], [0], [1], [0, 0, 1, 1], [], []>} : vector<16x64xbf16>, vector<64x256xbf16>, vector<16x256xf32> -> vector<16x256xf32>
    %25 = arith.addf %19, %24 : vector<16x256xf32>
    %c0_25 = arith.constant 0 : index
    %c0_26 = arith.constant 0 : index
    %26 = vector.load %arg3[%c0_25, %c0_26] : memref<1x256xf32, #tpu.memory_space<vmem>>, vector<1x256xf32>
    %27 = vector.broadcast %26 : vector<1x256xf32> to vector<16x256xf32>
    %28 = arith.addf %25, %27 : vector<16x256xf32>
    %cst_27 = arith.constant 0.000000e+00 : f32
    %29 = vector.broadcast %cst_27 : f32 to vector<16x256xf32>
    %30 = arith.maximumf %28, %29 : vector<16x256xf32>
    %c0_28 = arith.constant 0 : index
    %c0_29 = arith.constant 0 : index
    %c0_30 = arith.constant 0 : index
    %31 = vector.load %arg4[%c0_28, %c0_29, %c0_30] : memref<1x16x256xf32, #tpu.memory_space<vmem>>, vector<1x16x256xf32>
    %32 = vector.shape_cast %31 : vector<1x16x256xf32> to vector<16x256xf32>
    %33 = vector.shape_cast %30 : vector<16x256xf32> to vector<1x16x256xf32>
    tpu.vector_store %arg4[%c0_28, %c0_29, %c0_30], %33 {strides = array<i32>} : memref<1x16x256xf32, #tpu.memory_space<vmem>>, vector<1x16x256xf32>,
    return
  }
  func.func @transform_0(%arg0: i32) -> (i32, i32, i32) {
    %c0_i32 = arith.constant 0 : i32
    %c0_i32_0 = arith.constant 0 : i32
    %c0_i32_1 = arith.constant 0 : i32
    return %arg0, %c0_i32, %c0_i32_0 : i32, i32, i32
  }
  func.func @transform_1(%arg0: i32) -> (i32, i32, i32) {
    %c0_i32 = arith.constant 0 : i32
    %c0_i32_0 = arith.constant 0 : i32
    %c0_i32_1 = arith.constant 0 : i32
    %c0_i32_2 = arith.constant 0 : i32
    return %c0_i32, %c0_i32_0, %c0_i32_1 : i32, i32, i32
  }
  func.func @transform_2(%arg0: i32) -> (i32, i32) {
    %c0_i32 = arith.constant 0 : i32
    %c0_i32_0 = arith.constant 0 : i32
    %c0_i32_1 = arith.constant 0 : i32
    return %c0_i32, %c0_i32_0 : i32, i32
  }
  func.func @transform_3(%arg0: i32) -> (i32, i32, i32) {
    %c0_i32 = arith.constant 0 : i32
    %c0_i32_0 = arith.constant 0 : i32
    %c0_i32_1 = arith.constant 0 : i32
    return %arg0, %c0_i32, %c0_i32_0 : i32, i32, i32
  }
}

module attributes {stable_mosaic.version = 11 : i64} {
  func.func @_upsample_stage_kernel(%arg0: i32, %arg1: memref<1x32x128xf32, #tpu.memory_space<vmem>>, %arg2: memref<3x128x512xbf16, #tpu.memory_space<vmem>>, %arg3: memref<1x512xf32, #tpu.memory_space<vmem>>, %arg4: memref<1x32x512xf32, #tpu.memory_space<vmem>>, %arg5: memref<34x128xf32, #tpu.memory_space<vmem>>) attributes {dimension_semantics = [#tpu.dimension_semantics<parallel>], iteration_bounds = array<i64: 2>, scalar_prefetch = 0 : i64, scratch_operands = 1 : i64, tpu.core_type = #tpu.core_type<tc>, window_params = [{transform_indices = @transform_0, window_bounds = array<i64: 1, 32, 128>}, {pipeline_mode = #tpu.pipeline_mode<synchronous>, transform_indices = @transform_1, window_bounds = array<i64: 3, 128, 512>}, {pipeline_mode = #tpu.pipeline_mode<synchronous>, transform_indices = @transform_2, window_bounds = array<i64: 1, 512>}, {transform_indices = @transform_3, window_bounds = array<i64: 1, 32, 512>}]} {
    %cst = arith.constant 0.000000e+00 : f32
    %0 = vector.broadcast %cst : f32 to vector<1x128xf32>
    %c0 = arith.constant 0 : index
    %c0_0 = arith.constant 0 : index
    %1 = vector.load %arg5[%c0, %c0_0] : memref<34x128xf32, #tpu.memory_space<vmem>>, vector<1x128xf32>
    tpu.vector_store %arg5[%c0, %c0_0], %0 {strides = array<i32>} : memref<34x128xf32, #tpu.memory_space<vmem>>, vector<1x128xf32>,
    %cst_1 = arith.constant 0.000000e+00 : f32
    %2 = vector.broadcast %cst_1 : f32 to vector<1x128xf32>
    %c33 = arith.constant 33 : index
    %c0_2 = arith.constant 0 : index
    %3 = vector.load %arg5[%c33, %c0_2] : memref<34x128xf32, #tpu.memory_space<vmem>>, vector<1x128xf32>
    tpu.vector_store %arg5[%c33, %c0_2], %2 {strides = array<i32>} : memref<34x128xf32, #tpu.memory_space<vmem>>, vector<1x128xf32>,
    %c0_3 = arith.constant 0 : index
    %c0_4 = arith.constant 0 : index
    %c0_5 = arith.constant 0 : index
    %4 = vector.load %arg1[%c0_3, %c0_4, %c0_5] : memref<1x32x128xf32, #tpu.memory_space<vmem>>, vector<1x32x128xf32>
    %5 = vector.shape_cast %4 : vector<1x32x128xf32> to vector<32x128xf32>
    %c1 = arith.constant 1 : index
    %c0_6 = arith.constant 0 : index
    %6 = vector.load %arg5[%c1, %c0_6] : memref<34x128xf32, #tpu.memory_space<vmem>>, vector<32x128xf32>
    tpu.vector_store %arg5[%c1, %c0_6], %5 {strides = array<i32>} : memref<34x128xf32, #tpu.memory_space<vmem>>, vector<32x128xf32>,
    %cst_7 = arith.constant 0.000000e+00 : f32
    %7 = vector.broadcast %cst_7 : f32 to vector<32x512xf32>
    %c0_8 = arith.constant 0 : index
    %c0_9 = arith.constant 0 : index
    %8 = vector.load %arg5[%c0_8, %c0_9] : memref<34x128xf32, #tpu.memory_space<vmem>>, vector<32x128xf32>
    %9 = arith.truncf %8 : vector<32x128xf32> to vector<32x128xbf16>
    %c0_10 = arith.constant 0 : index
    %c0_11 = arith.constant 0 : index
    %c0_12 = arith.constant 0 : index
    %10 = vector.load %arg2[%c0_10, %c0_11, %c0_12] : memref<3x128x512xbf16, #tpu.memory_space<vmem>>, vector<1x128x512xbf16>
    %11 = vector.shape_cast %10 : vector<1x128x512xbf16> to vector<128x512xbf16>
    %cst_13 = arith.constant dense<0.000000e+00> : vector<32x512xf32>
    %12 = tpu.matmul %9, %11, %cst_13 {dimension_numbers = #tpu.dot_dimension_numbers<[1], [0], [0], [1], [0, 0, 1, 1], [], []>} : vector<32x128xbf16>, vector<128x512xbf16>, vector<32x512xf32> -> vector<32x512xf32>
    %13 = arith.addf %7, %12 : vector<32x512xf32>
    %c1_14 = arith.constant 1 : index
    %c0_15 = arith.constant 0 : index
    %14 = vector.load %arg5[%c1_14, %c0_15] : memref<34x128xf32, #tpu.memory_space<vmem>>, vector<32x128xf32>
    %15 = arith.truncf %14 : vector<32x128xf32> to vector<32x128xbf16>
    %c1_16 = arith.constant 1 : index
    %c0_17 = arith.constant 0 : index
    %c0_18 = arith.constant 0 : index
    %16 = vector.load %arg2[%c1_16, %c0_17, %c0_18] : memref<3x128x512xbf16, #tpu.memory_space<vmem>>, vector<1x128x512xbf16>
    %17 = vector.shape_cast %16 : vector<1x128x512xbf16> to vector<128x512xbf16>
    %cst_19 = arith.constant dense<0.000000e+00> : vector<32x512xf32>
    %18 = tpu.matmul %15, %17, %cst_19 {dimension_numbers = #tpu.dot_dimension_numbers<[1], [0], [0], [1], [0, 0, 1, 1], [], []>} : vector<32x128xbf16>, vector<128x512xbf16>, vector<32x512xf32> -> vector<32x512xf32>
    %19 = arith.addf %13, %18 : vector<32x512xf32>
    %c2 = arith.constant 2 : index
    %c0_20 = arith.constant 0 : index
    %20 = vector.load %arg5[%c2, %c0_20] : memref<34x128xf32, #tpu.memory_space<vmem>>, vector<32x128xf32>
    %21 = arith.truncf %20 : vector<32x128xf32> to vector<32x128xbf16>
    %c2_21 = arith.constant 2 : index
    %c0_22 = arith.constant 0 : index
    %c0_23 = arith.constant 0 : index
    %22 = vector.load %arg2[%c2_21, %c0_22, %c0_23] : memref<3x128x512xbf16, #tpu.memory_space<vmem>>, vector<1x128x512xbf16>
    %23 = vector.shape_cast %22 : vector<1x128x512xbf16> to vector<128x512xbf16>
    %cst_24 = arith.constant dense<0.000000e+00> : vector<32x512xf32>
    %24 = tpu.matmul %21, %23, %cst_24 {dimension_numbers = #tpu.dot_dimension_numbers<[1], [0], [0], [1], [0, 0, 1, 1], [], []>} : vector<32x128xbf16>, vector<128x512xbf16>, vector<32x512xf32> -> vector<32x512xf32>
    %25 = arith.addf %19, %24 : vector<32x512xf32>
    %c0_25 = arith.constant 0 : index
    %c0_26 = arith.constant 0 : index
    %26 = vector.load %arg3[%c0_25, %c0_26] : memref<1x512xf32, #tpu.memory_space<vmem>>, vector<1x512xf32>
    %27 = vector.broadcast %26 : vector<1x512xf32> to vector<32x512xf32>
    %28 = arith.addf %25, %27 : vector<32x512xf32>
    %cst_27 = arith.constant 0.000000e+00 : f32
    %29 = vector.broadcast %cst_27 : f32 to vector<32x512xf32>
    %30 = arith.maximumf %28, %29 : vector<32x512xf32>
    %c0_28 = arith.constant 0 : index
    %c0_29 = arith.constant 0 : index
    %c0_30 = arith.constant 0 : index
    %31 = vector.load %arg4[%c0_28, %c0_29, %c0_30] : memref<1x32x512xf32, #tpu.memory_space<vmem>>, vector<1x32x512xf32>
    %32 = vector.shape_cast %31 : vector<1x32x512xf32> to vector<32x512xf32>
    %33 = vector.shape_cast %30 : vector<32x512xf32> to vector<1x32x512xf32>
    tpu.vector_store %arg4[%c0_28, %c0_29, %c0_30], %33 {strides = array<i32>} : memref<1x32x512xf32, #tpu.memory_space<vmem>>, vector<1x32x512xf32>,
    return
  }
  func.func @transform_0(%arg0: i32) -> (i32, i32, i32) {
    %c0_i32 = arith.constant 0 : i32
    %c0_i32_0 = arith.constant 0 : i32
    %c0_i32_1 = arith.constant 0 : i32
    return %arg0, %c0_i32, %c0_i32_0 : i32, i32, i32
  }
  func.func @transform_1(%arg0: i32) -> (i32, i32, i32) {
    %c0_i32 = arith.constant 0 : i32
    %c0_i32_0 = arith.constant 0 : i32
    %c0_i32_1 = arith.constant 0 : i32
    %c0_i32_2 = arith.constant 0 : i32
    return %c0_i32, %c0_i32_0, %c0_i32_1 : i32, i32, i32
  }
  func.func @transform_2(%arg0: i32) -> (i32, i32) {
    %c0_i32 = arith.constant 0 : i32
    %c0_i32_0 = arith.constant 0 : i32
    %c0_i32_1 = arith.constant 0 : i32
    return %c0_i32, %c0_i32_0 : i32, i32
  }
  func.func @transform_3(%arg0: i32) -> (i32, i32, i32) {
    %c0_i32 = arith.constant 0 : i32
    %c0_i32_0 = arith.constant 0 : i32
    %c0_i32_1 = arith.constant 0 : i32
    return %arg0, %c0_i32, %c0_i32_0 : i32, i32, i32
  }
}

</mosaic_0001>

<bundles_post_ra>
// kernel: upsample_layer_forward.2
= control target key start
LH: loop header
LB: loop body
LE: loop exit
PB: predicated region body
PF: predicated region fallthrough
CT: control target
= control target key end

     0   :  { %s695_s12 = smov 0   ;;  %s799_s0 = inlined_call_operand.vmem [shape: f32[2,16,64], index: 0, kind: input, shape index: {}]   ;;  %s800_s1 = inlined_call_operand.vmem [shape: bf16[3,64,256], index: 1, kind: input, shape index: {}]   ;;  %s801_s2 = inlined_call_operand.vmem [shape: f32[1,256], index: 2, kind: input, shape index: {}]   ;;  %s802_s3 = inlined_call_operand.vmem [shape: f32[2,16,256], index: 3, kind: output, shape index: {}]  }
   0x1 LB: > { %s556_s13 = sadd.s32 4294967295, %s671_s12   ;;  %p560_p0 = scmp.ge.s32.totalorder %s671_s12, 1  ;;  %s671_s12 = sphi %s695_s12, %s13_s12  }
   0x2   : > { %p137_p1 = scmp.lt.s32.totalorder %s671_s12, 3 }
   0x4   : > { %p138_p2 = pnand %p560_p0, %p137_p1 }
   0x5   : > { %v630_v0 = vld [vmem:[%s800_s1 + $0x4] ss:$8 sps:$4 sm:$0xff] (!%p138_p2)   ;;  %p161_p3 = scmp.lt.s32.totalorder (!%p138_p2), %s556_s13, 1  ;;  %v632_v1 = vld [vmem:[%s800_s1] ss:$8 sps:$4 sm:$0xff] (!%p138_p2)   ;;  %v673_v2 = vmov (!%p138_p2), 0   ;;  %v479_v40 = vlaneseq (!%p138_p2) }
   0x6   : > { %141 = sbr.rel (%p138_p2) target bundleno = 265 (0x109), region = 32  ;;  %364 = vmatprep.mubr.bf16.mxu0 (!%p138_p2), %v673_v2  ;;  %vm172_vm0 = vcmask (!%p138_p2), 516096   ;;  %278 = vmatprep.mubr.bf16.mxu1 (!%p138_p2), %v673_v2  ;;  %v633_v3 = vld [vmem:[%s800_s1 + $0x14] ss:$8 sps:$4 sm:$0xff] (!%p138_p2)   ;;  %v674_v4 = vmov (!%p138_p2), 0.0   ;;  %vm177_vm1 = vcmask (!%p138_p2), 523264  }
   0x7   : > { %332 = vmatprep.subr.bf16.mxu0 (!%p138_p2), %v630_v0  ;;  %173 = vst.msk [vmem:[#allocation2] sm:$0x1] (!%p138_p2), %vm172_vm0, %v674_v4  ;;  %174 = vst.msk [vmem:[#allocation2 + $0x11] sm:$0x1] (!%p138_p2), %vm172_vm0, %v674_v4  ;;  %v635_v5 = vld [vmem:[%s800_s1 + $0x10] ss:$8 sps:$4 sm:$0xff] (!%p138_p2)  }
   0x8   : > { %333 = vmatpush1.bf16.msra.mxu0 (!%p138_p2), %v632_v1  ;;  %v636_v6 = vld [vmem:[%s800_s1 + $0x24] ss:$8 sps:$4 sm:$0xff] (!%p138_p2)   ;;  %v644_v8 = vld [vmem:[%s800_s1 + $0x40] ss:$8 sps:$4 sm:$0xff] (!%p138_p2)   ;;  %v639_v10 = vld [vmem:[%s800_s1 + $0x34] ss:$8 sps:$4 sm:$0xff] (!%p138_p2)  }
   0x9   : > { %334 = vmatprep.subr.bf16.mxu0 (!%p138_p2), %v633_v3  ;;  %v641_v7 = vld [vmem:[%s800_s1 + $0x44] ss:$8 sps:$4 sm:$0xff] (!%p138_p2)   ;;  %v638_v9 = vld [vmem:[%s800_s1 + $0x20] ss:$8 sps:$4 sm:$0xff] (!%p138_p2)   ;;  %v567_v11 = vld [vmem:[%s800_s1 + $0x50] sm:$0xff] (!%p138_p2)  ;;  %v480_v44 = vshrl.u32 (!%p138_p2), %v479_v40, 7 }
   0xa   : > { %246 = vmatprep.subr.bf16.mxu1 (!%p138_p2), %v641_v7  ;;  %v568_v12 = vld [vmem:[%s800_s1 + $0x58] sm:$0xff] (!%p138_p2)  ;;  %v647_v18 = vld [vmem:[%s800_s1 + $0x84] ss:$8 sps:$4 sm:$0xff] (!%p138_p2)   ;;  %v655_v20 = vld [vmem:[%s800_s1 + $0x60] ss:$8 sps:$4 sm:$0xff] (!%p138_p2)  }
   0xb   : > { %247 = vmatpush1.bf16.msra.mxu1 (!%p138_p2), %v644_v8  ;;  %v648_v13 = vld [vmem:[%s800_s1 + $0x54] ss:$8 sps:$4 sm:$0xff] (!%p138_p2)   ;;  %v575_v16 = vcombine.low (!%p138_p2), %v567_v11, %v568_v12  ;;  %v643_v17 = vld [vmem:[%s800_s1 + $0x30] ss:$8 sps:$4 sm:$0xff] (!%p138_p2)   ;;  %v653_v19 = vld [vmem:[%s800_s1 + $0x64] ss:$8 sps:$4 sm:$0xff] (!%p138_p2)  }
   0xc   : > { %335 = vmatpush1.bf16.msra.mxu0 (!%p138_p2), %v635_v5  ;;  %248 = vmatprep.subr.bf16.mxu1 (!%p138_p2), %v648_v13  ;;  %v659_v21 = vld [vmem:[%s800_s1 + $0x74] ss:$8 sps:$4 sm:$0xff] (!%p138_p2)   ;;  %v645_v22 = vld [vmem:[%s800_s1 + $0x80] ss:$8 sps:$4 sm:$0xff] (!%p138_p2)   ;;  %v661_v23 = vld [vmem:[%s800_s1 + $0x70] ss:$8 sps:$4 sm:$0xff] (!%p138_p2)  }
   0xd   : > { %s804_s13 = smov (!%p161_p3, %s556_s13), 1  ;;  %336 = vmatprep.subr.bf16.mxu0 %v636_v6  ;;  %v652_v28 = vld [vmem:[%s800_s1 + $0x94] ss:$8 sps:$4 sm:$0xff]   ;;  %v650_v31 = vld [vmem:[%s800_s1 + $0x90] ss:$8 sps:$4 sm:$0xff]   ;;  %v481_v45 = vsub.s32 0, %v480_v44 }
   0xe   : > { %s610_s24 = sshll.u32 %s804_s13, 4  ;;  %v658_v32 = vld [vmem:[%s800_s1 + $0xa4] ss:$8 sps:$4 sm:$0xff]   ;;  %v656_v33 = vld [vmem:[%s800_s1 + $0xa0] ss:$8 sps:$4 sm:$0xff]   ;;  %v485_v47 = vsub.s32 1, %v480_v44 }
   0xf   : > { %s165_s4 = scalar_lea.vmem %s799_s0, %s610_s24  ;;  %249 = vmatpush1.bf16.msra.mxu1 %v575_v16  ;;  %v664_v34 = vld [vmem:[%s800_s1 + $0xb4] ss:$8 sps:$4 sm:$0xff]   ;;  %v662_v35 = vld [vmem:[%s800_s1 + $0xb0] ss:$8 sps:$4 sm:$0xff]   ;;  %v477_v46 = vld [vmem:[%s801_s2] sm:$0x3] }
  0x10   : > { %v175_v14 = vld [vmem:[%s165_s4] sm:$0xff]  ;;  %v176_v15 = vld [vmem:[%s165_s4 + $0x8] sm:$0xff]  ;;  %337 = vmatpush1.bf16.msra.mxu0 %v638_v9  ;;  %250 = vmatprep.subr.bf16.mxu1 %v653_v19  ;;  %v482_v48 = vrot.slane %v477_v46, %v481_v45  ;;  %v486_v50 = vrot.slane %v477_v46, %v485_v47  ;;  %s611_s20 = sshll.u32 %s804_s13, 5 }
  0x11   : > { %178 = vst.msk [vmem:[#allocation2 + $0x1] sm:$0xff] %vm177_vm1, %v175_v14  ;;  %179 = vst.msk [vmem:[#allocation2 + $0x9] sm:$0xff] %vm177_vm1, %v176_v15  ;;  %338 = vmatprep.subr.bf16.mxu0 %v639_v10  ;;  %s170_s23 = scalar_lea.vmem %s802_s3, %s611_s20 }
  0x13   : > { %251 = vmatpush1.bf16.msra.mxu1 %v655_v20 }
  0x14   : > { %339 = vmatpush1.bf16.msra.mxu0 %v643_v17  ;;  %252 = vmatprep.subr.bf16.mxu1 %v659_v21 }
  0x15   : > { %430 = vmatprep.subr.bf16.mxu0 %v647_v18 }
  0x17   : > { %253 = vmatpush1.bf16.msra.mxu1 %v661_v23 }
  0x18   : > { %v180_v24 = vld [vmem:[#allocation2] sm:$0xff]  ;;  %v181_v25 = vld [vmem:[#allocation2 + $0x8] sm:$0xff] }
  0x19   : > { %v191_v26 = vld [vmem:[#allocation2 + $0x1] sm:$0xff]  ;;  %v182_v27 = vpack.c.bf16 %v181_v25, %v180_v24  ;;  %v192_v29 = vld [vmem:[#allocation2 + $0x9] sm:$0xff] }
  0x1a   : > { %v193_v30 = vpack.c.bf16 %v192_v29, %v191_v26  ;;  %v375_v36 = vld [vmem:[#allocation2 + $0x2] sm:$0xff]  ;;  %v376_v37 = vld [vmem:[#allocation2 + $0xa] sm:$0xff] }
  0x1b   : > { %590 = vmatmul.mubr.msk.bf16.vlgmr.msra.gmra.mrb[0].mxu0 %vm177_vm1, %v182_v27  ;;  %v377_v38 = vpack.c.bf16 %v376_v37, %v375_v36 }
  0x1c   : > { %431 = vmatpush1.bf16.msra.mxu0 %v645_v22  ;;  %462 = vmatprep.mubr.bf16.mxu0 %v673_v2 }
  0x1d   : > { %432 = vmatprep.subr.bf16.mxu0 %v652_v28  ;;  %581 = vmatmul.mubr.msk.bf16.vlgmr.msra.gmra.mrb[0].mxu1 %vm177_vm1, %v193_v30 }
  0x20   : > { %433 = vmatpush1.bf16.msra.mxu0 %v650_v31 }
  0x21   : > { %434 = vmatprep.subr.bf16.mxu0 %v658_v32 }
  0x24   : > { %435 = vmatpush1.bf16.msra.mxu0 %v656_v33 }
  0x25   : > { %436 = vmatprep.subr.bf16.mxu0 %v664_v34 }
  0x28   : > { %437 = vmatpush1.bf16.msra.mxu0 %v662_v35 }
  0x2b   : > { %607 = vmatmul.mubr.msk.bf16.vlgmr.msra.gmra.mrb[0].mxu0 %vm177_vm1, %v377_v38 }
  0xf0   : > { %v280_v39 = vpop.f32.mrb[0].mxu1 }
  0xf1   : > { %v282_v41 = vpop.f32.mrb[1].mxu1 }
  0xf2   : > { %v284_v42 = vpop.f32.mrb[2].mxu1 }
  0xf3   : > { %v286_v43 = vpop.f32.mrb[3].mxu1 }
  0xfe   : > { %v464_v49 = vpop.f32.mrb[0].mxu0 }
  0xff   : > { %v612_v51 = vadd.f32 %v464_v49, %v280_v39  ;;  %v466_v52 = vpop.f32.mrb[1].mxu0 }
 0x100   : > { %v613_v53 = vadd.f32 %v466_v52, %v282_v41  ;;  %v468_v54 = vpop.f32.mrb[2].mxu0 }
 0x101   : > { %v489_v55 = vadd.f32 %v612_v51, %v482_v48  ;;  %v614_v56 = vadd.f32 %v468_v54, %v284_v42  ;;  %v470_v57 = vpop.f32.mrb[3].mxu0 }
 0x102   : > { %v490_v58 = vadd.f32 %v613_v53, %v486_v50  ;;  %v615_v59 = vadd.f32 %v470_v57, %v286_v43 }
 0x103   : > { %v493_v60 = vmax.f32 %v489_v55, 0.0  ;;  %v491_v61 = vadd.f32 %v614_v56, %v482_v48 }
 0x104   : > { %v494_v62 = vmax.f32 %v490_v58, 0.0  ;;  %v492_v63 = vadd.f32 %v615_v59, %v486_v50 }
 0x105   : > { %497 = vst [vmem:[%s170_s23] sm:$0xff] %v493_v60  ;;  %v495_v0 = vmax.f32 %v491_v61, 0.0 }
 0x106   : > { %498 = vst [vmem:[%s170_s23 + $0x8] sm:$0xff] %v494_v62  ;;  %v496_v1 = vmax.f32 %v492_v63, 0.0 }
 0x107   : > { %499 = vst [vmem:[%s170_s23 + $0x10] sm:$0xff] %v495_v0 }
 0x108   : > { %500 = vst [vmem:[%s170_s23 + $0x18] sm:$0xff] %v496_v1 }
 0x109 PF: > { %s13_s12 = sadd.s32 1, %s671_s12  }
 0x10a   : > { %p10_p4 = scmp.ge.s32.totalorder %s13_s12, 4  }
 0x10c   :  { %12 = sbr.rel (!%p10_p4) target bundleno = 1 (0x1), region = 64 }

// kernel: upsample_layer_forward.3
= control target key start
LH: loop header
LB: loop body
LE: loop exit
PB: predicated region body
PF: predicated region fallthrough
CT: control target
= control target key end

     0   :  { %s1626_s12 = smov 0   ;;  %s1978_s0 = inlined_call_operand.vmem [shape: f32[2,32,128], index: 0, kind: input, shape index: {}]   ;;  %s1979_s1 = inlined_call_operand.vmem [shape: bf16[3,128,512], index: 1, kind: input, shape index: {}]   ;;  %s1980_s2 = inlined_call_operand.vmem [shape: f32[1,512], index: 2, kind: input, shape index: {}]   ;;  %s1981_s3 = inlined_call_operand.vmem [shape: f32[2,32,512], index: 3, kind: output, shape index: {}]  }
   0x1 LB: > { %s1237_s13 = sadd.s32 4294967295, %s1602_s12   ;;  %p1241_p0 = scmp.ge.s32.totalorder %s1602_s12, 1  ;;  %s1602_s12 = sphi %s1626_s12, %s13_s12  }
   0x2   : > { %p137_p1 = scmp.lt.s32.totalorder %s1602_s12, 3 }
   0x4   : > { %p138_p2 = pnand %p1241_p0, %p137_p1 }
   0x5   : > { %v1452_v0 = vld [vmem:[%s1979_s1 + $0x104] ss:$16 sps:$4 sm:$0xff] (!%p138_p2)   ;;  %v1454_v1 = vld [vmem:[%s1979_s1 + $0x10c] ss:$16 sps:$4 sm:$0xff] (!%p138_p2)   ;;  %v1604_v2 = vmov (!%p138_p2), 0   ;;  %v1605_v5 = vmov (!%p138_p2), 0.0  }
   0x6   : > { %141 = sbr.rel (%p138_p2) target bundleno = 331 (0x14b), region = 32  ;;  %451 = vmatprep.mubr.bf16.mxu0 (!%p138_p2), %v1604_v2  ;;  %504 = vmatprep.mubr.bf16.mxu1 (!%p138_p2), %v1604_v2  ;;  %v1456_v3 = vld [vmem:[%s1979_s1 + $0x100] ss:$16 sps:$4 sm:$0xff] (!%p138_p2)   ;;  %v1457_v4 = vld [vmem:[%s1979_s1 + $0x108] ss:$16 sps:$4 sm:$0xff] (!%p138_p2)   ;;  %p161_p3 = scmp.lt.s32.totalorder (!%p138_p2), %s1237_s13, 1 }
   0x7   : > { %419 = vmatprep.subr.bf16.mxu0 (!%p138_p2), %v1452_v0  ;;  %172 = vst [vmem:[#allocation2] sm:$0x1] (!%p138_p2), %v1605_v5  ;;  %173 = vst [vmem:[#allocation2 + $0x21] sm:$0x1] (!%p138_p2), %v1605_v5  ;;  %472 = vmatprep.subr.bf16.mxu1 (!%p138_p2), %v1454_v1  ;;  %v1458_v6 = vld [vmem:[%s1979_s1 + $0x124] ss:$16 sps:$4 sm:$0xff] (!%p138_p2)  }
   0x8   : > { %420 = vmatpush1.bf16.msra.mxu0 (!%p138_p2), %v1456_v3  ;;  %473 = vmatpush1.bf16.msra.mxu1 (!%p138_p2), %v1457_v4  ;;  %v1460_v7 = vld [vmem:[%s1979_s1 + $0x12c] ss:$16 sps:$4 sm:$0xff] (!%p138_p2)   ;;  %v1462_v8 = vld [vmem:[%s1979_s1 + $0x120] ss:$16 sps:$4 sm:$0xff] (!%p138_p2)   ;;  %v1463_v9 = vld [vmem:[%s1979_s1 + $0x128] ss:$16 sps:$4 sm:$0xff] (!%p138_p2)  }
   0x9   : > { %421 = vmatprep.subr.bf16.mxu0 (!%p138_p2), %v1458_v6  ;;  %474 = vmatprep.subr.bf16.mxu1 (!%p138_p2), %v1460_v7  ;;  %v1464_v10 = vld [vmem:[%s1979_s1 + $0x144] ss:$16 sps:$4 sm:$0xff] (!%p138_p2)   ;;  %v1466_v11 = vld [vmem:[%s1979_s1 + $0x14c] ss:$16 sps:$4 sm:$0xff] (!%p138_p2)   ;;  %v1468_v12 = vld [vmem:[%s1979_s1 + $0x140] ss:$16 sps:$4 sm:$0xff] (!%p138_p2)  }
   0xa   : > { %v1469_v13 = vld [vmem:[%s1979_s1 + $0x148] ss:$16 sps:$4 sm:$0xff] (!%p138_p2)   ;;  %v1470_v14 = vld [vmem:[%s1979_s1 + $0x164] ss:$16 sps:$4 sm:$0xff] (!%p138_p2)   ;;  %v1472_v15 = vld [vmem:[%s1979_s1 + $0x16c] ss:$16 sps:$4 sm:$0xff] (!%p138_p2)  }
   0xb   : > { %v1474_v16 = vld [vmem:[%s1979_s1 + $0x160] ss:$16 sps:$4 sm:$0xff] (!%p138_p2)   ;;  %v1475_v17 = vld [vmem:[%s1979_s1 + $0x168] ss:$16 sps:$4 sm:$0xff] (!%p138_p2)   ;;  %v1476_v18 = vld [vmem:[%s1979_s1 + $0x184] ss:$16 sps:$4 sm:$0xff] (!%p138_p2)  }
   0xc   : > { %422 = vmatpush1.bf16.msra.mxu0 (!%p138_p2), %v1462_v8  ;;  %475 = vmatpush1.bf16.msra.mxu1 (!%p138_p2), %v1463_v9  ;;  %v1478_v19 = vld [vmem:[%s1979_s1 + $0x18c] ss:$16 sps:$4 sm:$0xff] (!%p138_p2)   ;;  %v1480_v20 = vld [vmem:[%s1979_s1 + $0x180] ss:$16 sps:$4 sm:$0xff] (!%p138_p2)   ;;  %v1481_v21 = vld [vmem:[%s1979_s1 + $0x188] ss:$16 sps:$4 sm:$0xff] (!%p138_p2)  }
   0xd   : > { %423 = vmatprep.subr.bf16.mxu0 %v1464_v10  ;;  %476 = vmatprep.subr.bf16.mxu1 %v1466_v11  ;;  %s1983_s13 = smov (!%p161_p3, %s1237_s13), 1  ;;  %v1482_v22 = vld [vmem:[%s1979_s1 + $0x1a4] ss:$16 sps:$4 sm:$0xff]   ;;  %v1484_v23 = vld [vmem:[%s1979_s1 + $0x1ac] ss:$16 sps:$4 sm:$0xff]  }
   0xe   : > { %s1408_s6 = sshll.u32 %s1983_s13, 5  ;;  %v1486_v24 = vld [vmem:[%s1979_s1 + $0x1a0] ss:$16 sps:$4 sm:$0xff]   ;;  %v1487_v25 = vld [vmem:[%s1979_s1 + $0x1a8] ss:$16 sps:$4 sm:$0xff]   ;;  %s1409_s11 = sshll.u32 %s1983_s13, 7 }
   0xf   : > { %v1488_v26 = vld [vmem:[%s1979_s1 + $0x1c4] ss:$16 sps:$4 sm:$0xff]   ;;  %v1490_v27 = vld [vmem:[%s1979_s1 + $0x1cc] ss:$16 sps:$4 sm:$0xff]   ;;  %s1724_s19 = scalar_lea.vmem %s1978_s0, %s1408_s6  ;;  %v1492_v28 = vld [vmem:[%s1979_s1 + $0x1c0] ss:$16 sps:$4 sm:$0xff]   ;;  %s1957_s16 = scalar_lea.vmem %s1981_s3, %s1409_s11 }
  0x10   : > { %424 = vmatpush1.bf16.msra.mxu0 %v1468_v12  ;;  %477 = vmatpush1.bf16.msra.mxu1 %v1469_v13  ;;  %v1493_v29 = vld [vmem:[%s1979_s1 + $0x1c8] ss:$16 sps:$4 sm:$0xff]   ;;  %v174_v30 = vld [vmem:[%s1724_s19] sm:$0xff]  ;;  %v1496_v33 = vld [vmem:[%s1979_s1 + $0x1ec] ss:$16 sps:$4 sm:$0xff]  }
  0x11   : > { %425 = vmatprep.subr.bf16.mxu0 %v1470_v14  ;;  %478 = vmatprep.subr.bf16.mxu1 %v1472_v15  ;;  %v175_v31 = vld [vmem:[%s1724_s19 + $0x8] sm:$0xff]  ;;  %v1494_v32 = vld [vmem:[%s1979_s1 + $0x1e4] ss:$16 sps:$4 sm:$0xff]   ;;  %178 = vst [vmem:[#allocation2 + $0x1] sm:$0xff] %v174_v30  ;;  %v1498_v34 = vld [vmem:[%s1979_s1 + $0x1e0] ss:$16 sps:$4 sm:$0xff]  }
  0x12   : > { %179 = vst [vmem:[#allocation2 + $0x9] sm:$0xff] %v175_v31  ;;  %v1499_v35 = vld [vmem:[%s1979_s1 + $0x1e8] ss:$16 sps:$4 sm:$0xff]   ;;  %v1502_v36 = vld [vmem:[%s1979_s1 + $0x4] ss:$16 sps:$4 sm:$0xff]   ;;  %v224_v38 = vpack.c.bf16 %v175_v31, %v174_v30 }
  0x13   : > { %v1505_v37 = vld [vmem:[%s1979_s1 + $0xc] ss:$16 sps:$4 sm:$0xff]   ;;  %v1500_v39 = vld [vmem:[%s1979_s1] ss:$16 sps:$4 sm:$0xff]   ;;  %v1503_v40 = vld [vmem:[%s1979_s1 + $0x8] ss:$16 sps:$4 sm:$0xff]  }
  0x14   : > { %426 = vmatpush1.bf16.msra.mxu0 %v1474_v16  ;;  %479 = vmatpush1.bf16.msra.mxu1 %v1475_v17  ;;  %v1508_v41 = vld [vmem:[%s1979_s1 + $0x24] ss:$16 sps:$4 sm:$0xff]   ;;  %v1511_v42 = vld [vmem:[%s1979_s1 + $0x2c] ss:$16 sps:$4 sm:$0xff]   ;;  %v1506_v43 = vld [vmem:[%s1979_s1 + $0x20] ss:$16 sps:$4 sm:$0xff]  }
  0x15   : > { %427 = vmatprep.subr.bf16.mxu0 %v1476_v18  ;;  %480 = vmatprep.subr.bf16.mxu1 %v1478_v19  ;;  %v1509_v44 = vld [vmem:[%s1979_s1 + $0x28] ss:$16 sps:$4 sm:$0xff]   ;;  %v1514_v45 = vld [vmem:[%s1979_s1 + $0x44] ss:$16 sps:$4 sm:$0xff]   ;;  %v1517_v46 = vld [vmem:[%s1979_s1 + $0x4c] ss:$16 sps:$4 sm:$0xff]  }
  0x16   : > { %v1512_v47 = vld [vmem:[%s1979_s1 + $0x40] ss:$16 sps:$4 sm:$0xff]   ;;  %v1515_v48 = vld [vmem:[%s1979_s1 + $0x48] ss:$16 sps:$4 sm:$0xff]   ;;  %v1520_v49 = vld [vmem:[%s1979_s1 + $0x64] ss:$16 sps:$4 sm:$0xff]  }
  0x17   : > { %v1523_v50 = vld [vmem:[%s1979_s1 + $0x6c] ss:$16 sps:$4 sm:$0xff]   ;;  %v176_v51 = vld [vmem:[%s1724_s19 + $0x10] sm:$0xff]  ;;  %v1521_v55 = vld [vmem:[%s1979_s1 + $0x68] ss:$16 sps:$4 sm:$0xff]  }
  0x18   : > { %428 = vmatpush1.bf16.msra.mxu0 %v1480_v20  ;;  %481 = vmatpush1.bf16.msra.mxu1 %v1481_v21  ;;  %v177_v52 = vld [vmem:[%s1724_s19 + $0x18] sm:$0xff]  ;;  %180 = vst [vmem:[#allocation2 + $0x11] sm:$0xff] %v176_v51  ;;  %v1518_v54 = vld [vmem:[%s1979_s1 + $0x60] ss:$16 sps:$4 sm:$0xff]   ;;  %v1526_v56 = vld [vmem:[%s1979_s1 + $0x84] ss:$16 sps:$4 sm:$0xff]  }
  0x19   : > { %429 = vmatprep.subr.bf16.mxu0 %v1482_v22  ;;  %482 = vmatprep.subr.bf16.mxu1 %v1484_v23  ;;  %181 = vst [vmem:[#allocation2 + $0x19] sm:$0xff] %v177_v52  ;;  %v225_v53 = vpack.c.bf16 %v177_v52, %v176_v51  ;;  %v1529_v57 = vld [vmem:[%s1979_s1 + $0x8c] ss:$16 sps:$4 sm:$0xff]   ;;  %v1524_v58 = vld [vmem:[%s1979_s1 + $0x80] ss:$16 sps:$4 sm:$0xff]  }
  0x1a   : > { %v1527_v59 = vld [vmem:[%s1979_s1 + $0x88] ss:$16 sps:$4 sm:$0xff]   ;;  %v1532_v60 = vld [vmem:[%s1979_s1 + $0xa4] ss:$16 sps:$4 sm:$0xff]   ;;  %v1535_v61 = vld [vmem:[%s1979_s1 + $0xac] ss:$16 sps:$4 sm:$0xff]  }
  0x1b   : > { %v1530_v62 = vld [vmem:[%s1979_s1 + $0xa0] ss:$16 sps:$4 sm:$0xff]   ;;  %v1533_v63 = vld [vmem:[%s1979_s1 + $0xa8] ss:$16 sps:$4 sm:$0xff]   ;;  %v1538_v0 = vld [vmem:[%s1979_s1 + $0xc4] ss:$16 sps:$4 sm:$0xff]  }
  0x1c   : > { %430 = vmatpush1.bf16.msra.mxu0 %v1486_v24  ;;  %483 = vmatpush1.bf16.msra.mxu1 %v1487_v25  ;;  %v1541_v1 = vld [vmem:[%s1979_s1 + $0xcc] ss:$16 sps:$4 sm:$0xff]   ;;  %v1536_v3 = vld [vmem:[%s1979_s1 + $0xc0] ss:$16 sps:$4 sm:$0xff]   ;;  %v1539_v4 = vld [vmem:[%s1979_s1 + $0xc8] ss:$16 sps:$4 sm:$0xff]  }
  0x1d   : > { %431 = vmatprep.subr.bf16.mxu0 %v1488_v26  ;;  %484 = vmatprep.subr.bf16.mxu1 %v1490_v27  ;;  %v1544_v5 = vld [vmem:[%s1979_s1 + $0xe4] ss:$16 sps:$4 sm:$0xff]   ;;  %v1547_v6 = vld [vmem:[%s1979_s1 + $0xec] ss:$16 sps:$4 sm:$0xff]   ;;  %v1542_v7 = vld [vmem:[%s1979_s1 + $0xe0] ss:$16 sps:$4 sm:$0xff]  }
  0x1e   : > { %v1545_v8 = vld [vmem:[%s1979_s1 + $0xe8] ss:$16 sps:$4 sm:$0xff]   ;;  %v1550_v9 = vld [vmem:[%s1979_s1 + $0x204] ss:$16 sps:$4 sm:$0xff]   ;;  %v1553_v12 = vld [vmem:[%s1979_s1 + $0x20c] ss:$16 sps:$4 sm:$0xff]  }
  0x1f   : > { %v182_v10 = vld [vmem:[#allocation2] sm:$0xff]  ;;  %v183_v11 = vld [vmem:[#allocation2 + $0x8] sm:$0xff]  ;;  %v184_v20 = vld [vmem:[#allocation2 + $0x10] sm:$0xff] }
  0x20   : > { %432 = vmatpush1.bf16.msra.mxu0 %v1492_v28  ;;  %485 = vmatpush1.bf16.msra.mxu1 %v1493_v29  ;;  %v1548_v13 = vld [vmem:[%s1979_s1 + $0x200] ss:$16 sps:$4 sm:$0xff]   ;;  %v1551_v14 = vld [vmem:[%s1979_s1 + $0x208] ss:$16 sps:$4 sm:$0xff]   ;;  %v186_v15 = vpack.c.bf16 %v183_v11, %v182_v10  ;;  %v1556_v16 = vld [vmem:[%s1979_s1 + $0x224] ss:$16 sps:$4 sm:$0xff]  }
  0x21   : > { %433 = vmatprep.subr.bf16.mxu0 %v1494_v32  ;;  %486 = vmatprep.subr.bf16.mxu1 %v1496_v33  ;;  %v1559_v17 = vld [vmem:[%s1979_s1 + $0x22c] ss:$16 sps:$4 sm:$0xff]   ;;  %v1554_v18 = vld [vmem:[%s1979_s1 + $0x220] ss:$16 sps:$4 sm:$0xff]   ;;  %v1557_v19 = vld [vmem:[%s1979_s1 + $0x228] ss:$16 sps:$4 sm:$0xff]  }
  0x22   : > { %v185_v21 = vld [vmem:[#allocation2 + $0x18] sm:$0xff]  ;;  %v1562_v22 = vld [vmem:[%s1979_s1 + $0x244] ss:$16 sps:$4 sm:$0xff]   ;;  %v1560_v25 = vld [vmem:[%s1979_s1 + $0x240] ss:$16 sps:$4 sm:$0xff]  }
  0x23   : > { %v1565_v23 = vld [vmem:[%s1979_s1 + $0x24c] ss:$16 sps:$4 sm:$0xff]   ;;  %v187_v24 = vpack.c.bf16 %v185_v21, %v184_v20  ;;  %v1563_v26 = vld [vmem:[%s1979_s1 + $0x248] ss:$16 sps:$4 sm:$0xff]   ;;  %v1568_v27 = vld [vmem:[%s1979_s1 + $0x264] ss:$16 sps:$4 sm:$0xff]  }
  0x24   : > { %434 = vmatpush1.bf16.msra.mxu0 %v1498_v34  ;;  %487 = vmatpush1.bf16.msra.mxu1 %v1499_v35  ;;  %v1571_v28 = vld [vmem:[%s1979_s1 + $0x26c] ss:$16 sps:$4 sm:$0xff]   ;;  %v1566_v29 = vld [vmem:[%s1979_s1 + $0x260] ss:$16 sps:$4 sm:$0xff]   ;;  %v1569_v30 = vld [vmem:[%s1979_s1 + $0x268] ss:$16 sps:$4 sm:$0xff]  }
  0x25   : > { %685 = vmatprep.subr.bf16.mxu0 %v1502_v36  ;;  %738 = vmatprep.subr.bf16.mxu1 %v1505_v37  ;;  %v1574_v31 = vld [vmem:[%s1979_s1 + $0x284] ss:$16 sps:$4 sm:$0xff]   ;;  %v1577_v32 = vld [vmem:[%s1979_s1 + $0x28c] ss:$16 sps:$4 sm:$0xff]   ;;  %v1572_v33 = vld [vmem:[%s1979_s1 + $0x280] ss:$16 sps:$4 sm:$0xff]  }
  0x26   : > { %v1575_v34 = vld [vmem:[%s1979_s1 + $0x288] ss:$16 sps:$4 sm:$0xff]   ;;  %v1580_v35 = vld [vmem:[%s1979_s1 + $0x2a4] ss:$16 sps:$4 sm:$0xff]   ;;  %v1583_v36 = vld [vmem:[%s1979_s1 + $0x2ac] ss:$16 sps:$4 sm:$0xff]  }
  0x27   : > { %452 = vmatmul.mubr.bf16.vlgmr.msra.gmra.mrb[0].mxu0 %v224_v38  ;;  %505 = vmatmul.mubr.bf16.vlgmr.msra.gmra.mrb[0].mxu1 %v224_v38  ;;  %v1578_v37 = vld [vmem:[%s1979_s1 + $0x2a0] ss:$16 sps:$4 sm:$0xff]   ;;  %v1581_v38 = vld [vmem:[%s1979_s1 + $0x2a8] ss:$16 sps:$4 sm:$0xff]  }
  0x28   : > { %686 = vmatpush1.bf16.msra.mxu0 %v1500_v39  ;;  %739 = vmatpush1.bf16.msra.mxu1 %v1503_v40  ;;  %v1586_v39 = vld [vmem:[%s1979_s1 + $0x2c4] ss:$16 sps:$4 sm:$0xff]   ;;  %v1589_v40 = vld [vmem:[%s1979_s1 + $0x2cc] ss:$16 sps:$4 sm:$0xff]  }
  0x29   : > { %687 = vmatprep.subr.bf16.mxu0 %v1508_v41  ;;  %740 = vmatprep.subr.bf16.mxu1 %v1511_v42  ;;  %v1584_v41 = vld [vmem:[%s1979_s1 + $0x2c0] ss:$16 sps:$4 sm:$0xff]   ;;  %v1587_v42 = vld [vmem:[%s1979_s1 + $0x2c8] ss:$16 sps:$4 sm:$0xff]  }
  0x2a   : > { %461 = vmatprep.mubr.bf16.mxu0 %v1604_v2  ;;  %514 = vmatprep.mubr.bf16.mxu1 %v1604_v2  ;;  %v794_v51 = vld [vmem:[#allocation2 + $0x1a] sm:$0xff] }
  0x2c   : > { %688 = vmatpush1.bf16.msra.mxu0 %v1506_v43  ;;  %741 = vmatpush1.bf16.msra.mxu1 %v1509_v44  ;;  %v1592_v43 = vld [vmem:[%s1979_s1 + $0x2e4] ss:$16 sps:$4 sm:$0xff]   ;;  %v1595_v44 = vld [vmem:[%s1979_s1 + $0x2ec] ss:$16 sps:$4 sm:$0xff]  }
  0x2d   : > { %689 = vmatprep.subr.bf16.mxu0 %v1514_v45  ;;  %742 = vmatprep.subr.bf16.mxu1 %v1517_v46  ;;  %v1590_v45 = vld [vmem:[%s1979_s1 + $0x2e0] ss:$16 sps:$4 sm:$0xff]   ;;  %v1593_v46 = vld [vmem:[%s1979_s1 + $0x2e8] ss:$16 sps:$4 sm:$0xff]  }
  0x2f   : > { %462 = vmatmul.mubr.bf16.gmra.mrb[4].mxu0 %v225_v53  ;;  %515 = vmatmul.mubr.bf16.gmra.mrb[4].mxu1 %v225_v53  ;;  %v1114_v53 = vlaneseq }
  0x30   : > { %690 = vmatpush1.bf16.msra.mxu0 %v1512_v47  ;;  %743 = vmatpush1.bf16.msra.mxu1 %v1515_v48  ;;  %v791_v47 = vld [vmem:[#allocation2 + $0x2] sm:$0xff]  ;;  %v792_v48 = vld [vmem:[#allocation2 + $0xa] sm:$0xff] }
  0x31   : > { %691 = vmatprep.subr.bf16.mxu0 %v1520_v49  ;;  %744 = vmatprep.subr.bf16.mxu1 %v1523_v50  ;;  %v795_v49 = vpack.c.bf16 %v792_v48, %v791_v47  ;;  %v793_v50 = vld [vmem:[#allocation2 + $0x12] sm:$0xff] }
  0x32   : > { %717 = vmatprep.mubr.bf16.mxu0 %v1604_v2  ;;  %770 = vmatprep.mubr.bf16.mxu1 %v1604_v2  ;;  %v796_v52 = vpack.c.bf16 %v794_v51, %v793_v50 }
  0x34   : > { %692 = vmatpush1.bf16.msra.mxu0 %v1518_v54  ;;  %745 = vmatpush1.bf16.msra.mxu1 %v1521_v55  ;;  %v1115_v54 = vshrl.u32 %v1114_v53, 7 }
  0x35   : > { %693 = vmatprep.subr.bf16.mxu0 %v1526_v56  ;;  %746 = vmatprep.subr.bf16.mxu1 %v1529_v57  ;;  %v1112_v57 = vld [vmem:[%s1980_s2] sm:$0xf] }
  0x36   : > { %v1116_v55 = vsub.s32 0, %v1115_v54  ;;  %v1124_v56 = vsub.s32 2, %v1115_v54 }
  0x38   : > { %694 = vmatpush1.bf16.msra.mxu0 %v1524_v58  ;;  %747 = vmatpush1.bf16.msra.mxu1 %v1527_v59  ;;  %v1120_v58 = vsub.s32 1, %v1115_v54  ;;  %v1128_v59 = vsub.s32 3, %v1115_v54 }
  0x39   : > { %695 = vmatprep.subr.bf16.mxu0 %v1532_v60  ;;  %748 = vmatprep.subr.bf16.mxu1 %v1535_v61  ;;  %v1117_v60 = vrot.slane %v1112_v57, %v1116_v55  ;;  %v1125_v61 = vrot.slane %v1112_v57, %v1124_v56 }
  0x3c   : > { %696 = vmatpush1.bf16.msra.mxu0 %v1530_v62  ;;  %749 = vmatpush1.bf16.msra.mxu1 %v1533_v63  ;;  %v1121_v62 = vrot.slane %v1112_v57, %v1120_v58 }
  0x3d   : > { %697 = vmatprep.subr.bf16.mxu0 %v1538_v0  ;;  %750 = vmatprep.subr.bf16.mxu1 %v1541_v1 }
  0x40   : > { %698 = vmatpush1.bf16.msra.mxu0 %v1536_v3  ;;  %751 = vmatpush1.bf16.msra.mxu1 %v1539_v4 }
  0x41   : > { %699 = vmatprep.subr.bf16.mxu0 %v1544_v5  ;;  %752 = vmatprep.subr.bf16.mxu1 %v1547_v6 }
  0x44   : > { %700 = vmatpush1.bf16.msra.mxu0 %v1542_v7  ;;  %753 = vmatpush1.bf16.msra.mxu1 %v1545_v8 }
  0x45   : > { %990 = vmatprep.subr.bf16.mxu0 %v1550_v9  ;;  %1043 = vmatprep.subr.bf16.mxu1 %v1553_v12 }
  0x47   : > { %718 = vmatmul.mubr.bf16.vlgmr.msra.gmra.mrb[0].mxu0 %v186_v15  ;;  %771 = vmatmul.mubr.bf16.vlgmr.msra.gmra.mrb[0].mxu1 %v186_v15 }
  0x48   : > { %991 = vmatpush1.bf16.msra.mxu0 %v1548_v13  ;;  %1044 = vmatpush1.bf16.msra.mxu1 %v1551_v14 }
  0x49   : > { %992 = vmatprep.subr.bf16.mxu0 %v1556_v16  ;;  %1045 = vmatprep.subr.bf16.mxu1 %v1559_v17 }
  0x4a   : > { %727 = vmatprep.mubr.bf16.mxu0 %v1604_v2  ;;  %780 = vmatprep.mubr.bf16.mxu1 %v1604_v2 }
  0x4c   : > { %993 = vmatpush1.bf16.msra.mxu0 %v1554_v18  ;;  %1046 = vmatpush1.bf16.msra.mxu1 %v1557_v19 }
  0x4d   : > { %994 = vmatprep.subr.bf16.mxu0 %v1562_v22  ;;  %1047 = vmatprep.subr.bf16.mxu1 %v1565_v23 }
  0x4f   : > { %728 = vmatmul.mubr.bf16.gmra.mrb[4].mxu0 %v187_v24  ;;  %781 = vmatmul.mubr.bf16.gmra.mrb[4].mxu1 %v187_v24 }
  0x50   : > { %995 = vmatpush1.bf16.msra.mxu0 %v1560_v25  ;;  %1048 = vmatpush1.bf16.msra.mxu1 %v1563_v26 }
  0x51   : > { %996 = vmatprep.subr.bf16.mxu0 %v1568_v27  ;;  %1049 = vmatprep.subr.bf16.mxu1 %v1571_v28 }
  0x52   : > { %1022 = vmatprep.mubr.bf16.mxu0 %v1604_v2  ;;  %1075 = vmatprep.mubr.bf16.mxu1 %v1604_v2 }
  0x54   : > { %997 = vmatpush1.bf16.msra.mxu0 %v1566_v29  ;;  %1050 = vmatpush1.bf16.msra.mxu1 %v1569_v30 }
  0x55   : > { %998 = vmatprep.subr.bf16.mxu0 %v1574_v31  ;;  %1051 = vmatprep.subr.bf16.mxu1 %v1577_v32 }
  0x58   : > { %999 = vmatpush1.bf16.msra.mxu0 %v1572_v33  ;;  %1052 = vmatpush1.bf16.msra.mxu1 %v1575_v34 }
  0x59   : > { %1000 = vmatprep.subr.bf16.mxu0 %v1580_v35  ;;  %1053 = vmatprep.subr.bf16.mxu1 %v1583_v36 }
  0x5c   : > { %1001 = vmatpush1.bf16.msra.mxu0 %v1578_v37  ;;  %1054 = vmatpush1.bf16.msra.mxu1 %v1581_v38 }
  0x5d   : > { %1002 = vmatprep.subr.bf16.mxu0 %v1586_v39  ;;  %1055 = vmatprep.subr.bf16.mxu1 %v1589_v40 }
  0x60   : > { %1003 = vmatpush1.bf16.msra.mxu0 %v1584_v41  ;;  %1056 = vmatpush1.bf16.msra.mxu1 %v1587_v42 }
  0x61   : > { %1004 = vmatprep.subr.bf16.mxu0 %v1592_v43  ;;  %1057 = vmatprep.subr.bf16.mxu1 %v1595_v44 }
  0x64   : > { %1005 = vmatpush1.bf16.msra.mxu0 %v1590_v45  ;;  %1058 = vmatpush1.bf16.msra.mxu1 %v1593_v46 }
  0x67   : > { %1023 = vmatmul.mubr.bf16.vlgmr.msra.gmra.mrb[0].mxu0 %v795_v49  ;;  %1076 = vmatmul.mubr.bf16.vlgmr.msra.gmra.mrb[0].mxu1 %v795_v49 }
  0x68   : > { %1032 = vmatprep.mubr.bf16.mxu0 %v1604_v2  ;;  %1085 = vmatprep.mubr.bf16.mxu1 %v1604_v2  ;;  %v1129_v2 = vrot.slane %v1112_v57, %v1128_v59 }
  0x6f   : > { %1033 = vmatmul.mubr.bf16.gmra.mrb[4].mxu0 %v796_v52  ;;  %1086 = vmatmul.mubr.bf16.gmra.mrb[4].mxu1 %v796_v52 }
 0x13a   : > { %v1024_v63 = vpop.f32.mrb[0].mxu0  ;;  %v1077_v0 = vpop.f32.mrb[0].mxu1 }
 0x13b   : > { %v1134_v1 = vadd.f32 %v1117_v60, %v1024_v63  ;;  %v1136_v3 = vadd.f32 %v1125_v61, %v1077_v0  ;;  %v1026_v4 = vpop.f32.mrb[1].mxu0  ;;  %v1079_v5 = vpop.f32.mrb[1].mxu1 }
 0x13c   : > { %v1135_v6 = vadd.f32 %v1121_v62, %v1026_v4  ;;  %v1137_v7 = vadd.f32 %v1129_v2, %v1079_v5  ;;  %v1028_v8 = vpop.f32.mrb[2].mxu0  ;;  %v1081_v9 = vpop.f32.mrb[2].mxu1 }
 0x13d   : > { %v1150_v10 = vmax.f32 %v1134_v1, 0.0  ;;  %v1152_v11 = vmax.f32 %v1136_v3, 0.0  ;;  %v1138_v12 = vadd.f32 %v1117_v60, %v1028_v8  ;;  %v1140_v13 = vadd.f32 %v1125_v61, %v1081_v9  ;;  %v1030_v14 = vpop.f32.mrb[3].mxu0  ;;  %v1083_v15 = vpop.f32.mrb[3].mxu1 }
 0x13e   : > { %v1151_v16 = vmax.f32 %v1135_v6, 0.0  ;;  %v1153_v17 = vmax.f32 %v1137_v7, 0.0  ;;  %v1139_v18 = vadd.f32 %v1121_v62, %v1030_v14  ;;  %v1141_v19 = vadd.f32 %v1129_v2, %v1083_v15 }
 0x13f   : > { %1166 = vst [vmem:[%s1957_s16] sm:$0xff] %v1150_v10  ;;  %1168 = vst [vmem:[%s1957_s16 + $0x10] sm:$0xff] %v1152_v11  ;;  %v1154_v20 = vmax.f32 %v1138_v12, 0.0  ;;  %v1156_v21 = vmax.f32 %v1140_v13, 0.0 }
 0x140   : > { %1167 = vst [vmem:[%s1957_s16 + $0x8] sm:$0xff] %v1151_v16  ;;  %1169 = vst [vmem:[%s1957_s16 + $0x18] sm:$0xff] %v1153_v17  ;;  %v1155_v22 = vmax.f32 %v1139_v18, 0.0  ;;  %v1157_v23 = vmax.f32 %v1141_v19, 0.0 }
 0x141   : > { %1170 = vst [vmem:[%s1957_s16 + $0x20] sm:$0xff] %v1154_v20  ;;  %1172 = vst [vmem:[%s1957_s16 + $0x30] sm:$0xff] %v1156_v21 }
 0x142   : > { %1171 = vst [vmem:[%s1957_s16 + $0x28] sm:$0xff] %v1155_v22  ;;  %1173 = vst [vmem:[%s1957_s16 + $0x38] sm:$0xff] %v1157_v23  ;;  %v1034_v24 = vpop.f32.mrb[4].mxu0  ;;  %v1087_v25 = vpop.f32.mrb[4].mxu1 }
 0x143   : > { %v1142_v26 = vadd.f32 %v1117_v60, %v1034_v24  ;;  %v1144_v27 = vadd.f32 %v1125_v61, %v1087_v25  ;;  %v1036_v28 = vpop.f32.mrb[5].mxu0  ;;  %v1089_v29 = vpop.f32.mrb[5].mxu1 }
 0x144   : > { %v1143_v30 = vadd.f32 %v1121_v62, %v1036_v28  ;;  %v1145_v31 = vadd.f32 %v1129_v2, %v1089_v29  ;;  %v1038_v32 = vpop.f32.mrb[6].mxu0  ;;  %v1091_v33 = vpop.f32.mrb[6].mxu1 }
 0x145   : > { %v1158_v34 = vmax.f32 %v1142_v26, 0.0  ;;  %v1160_v35 = vmax.f32 %v1144_v27, 0.0  ;;  %v1146_v36 = vadd.f32 %v1117_v60, %v1038_v32  ;;  %v1148_v37 = vadd.f32 %v1125_v61, %v1091_v33  ;;  %v1040_v38 = vpop.f32.mrb[7].mxu0  ;;  %v1093_v39 = vpop.f32.mrb[7].mxu1 }
 0x146   : > { %v1159_v40 = vmax.f32 %v1143_v30, 0.0  ;;  %v1161_v41 = vmax.f32 %v1145_v31, 0.0  ;;  %v1147_v42 = vadd.f32 %v1121_v62, %v1040_v38  ;;  %v1149_v43 = vadd.f32 %v1129_v2, %v1093_v39 }
 0x147   : > { %1174 = vst [vmem:[%s1957_s16 + $0x40] sm:$0xff] %v1158_v34  ;;  %1176 = vst [vmem:[%s1957_s16 + $0x50] sm:$0xff] %v1160_v35  ;;  %v1162_v44 = vmax.f32 %v1146_v36, 0.0  ;;  %v1164_v45 = vmax.f32 %v1148_v37, 0.0 }
 0x148   : > { %1175 = vst [vmem:[%s1957_s16 + $0x48] sm:$0xff] %v1159_v40  ;;  %1177 = vst [vmem:[%s1957_s16 + $0x58] sm:$0xff] %v1161_v41  ;;  %v1163_v46 = vmax.f32 %v1147_v42, 0.0  ;;  %v1165_v47 = vmax.f32 %v1149_v43, 0.0 }
 0x149   : > { %1178 = vst [vmem:[%s1957_s16 + $0x60] sm:$0xff] %v1162_v44  ;;  %1180 = vst [vmem:[%s1957_s16 + $0x70] sm:$0xff] %v1164_v45 }
 0x14a   : > { %1179 = vst [vmem:[%s1957_s16 + $0x68] sm:$0xff] %v1163_v46  ;;  %1181 = vst [vmem:[%s1957_s16 + $0x78] sm:$0xff] %v1165_v47 }
 0x14b PF: > { %s13_s12 = sadd.s32 1, %s1602_s12  }
 0x14c   : > { %p10_p4 = scmp.ge.s32.totalorder %s13_s12, 4  }
 0x14e   :  { %12 = sbr.rel (!%p10_p4) target bundleno = 1 (0x1), region = 64 }

</bundles_post_ra>
